<compile_context>
chip_gen: v7x
topology: tpu7x:2x2x1
jax: 0.10.0
libtpu: 0.0.40
codegen_flags: <defaults>
</compile_context>

<pallas_src>
import functools

import jax
import jax.numpy as jnp
import numpy as np
from jax import lax
from jax.experimental import pallas as pl
from jax.experimental.pallas import tpu as pltpu

NUM_CLASSES = 11
GAMMA = 2

# Anchors per grid step.
# Dense path: ~352 B/anchor of double-buffered VMEM -> 32768 anchors ~= 11.5 MiB,
# comfortably under the 32 MiB scoped limit while keeping the grid-step count
# small (per-step overhead ~0.35 us matters most on v7x's ~3.2 TB/s HBM).
MAX_TILE_N_DENSE = 32768
# Fallback path (N % 32 != 0): the (1, 4*tile) loc views are 8x sublane-padded
# in VMEM, so cap lower (~8 MiB double-buffered).
MAX_TILE_N_FLAT = 8192


def _round_up(x, m):
    return ((x + m - 1) // m) * m


def _round_down(x, m):
    return (x // m) * m


def _box_loss_kernel(loc_p_ref, loc_t_ref, conf_ref, lab_ref,
                     loc_out_ref, conf_out_ref, *, gamma, inv_num_pos):
    """One tile of anchors.

    loc_p_ref / loc_t_ref / loc_out_ref: flat lane-dense views of the (N, 4)
        loc tensors (either (rows, 128) or (1, 4*tile)); pure elementwise.
    conf_ref: (C, T) logits, anchors on lanes.   lab_ref: (1, T) int32 labels.
    conf_out_ref: (1, T) focal loss, anchors on lanes.
    Negatives are NOT masked here: the positives-only compaction outside the
    kernel discards them, so only the constant 1/num_positives scale is folded.
    """
    scale = jnp.float32(inv_num_pos)

    # ---------------- L2 / MSE (reduction='none') ----------------
    diff = loc_p_ref[...].astype(jnp.float32) - loc_t_ref[...].astype(jnp.float32)
    loc_out_ref[...] = (diff * diff) * scale

    # ---------------- Focal loss (reduction='none') ----------------
    logits = conf_ref[...].astype(jnp.float32)                  # (C, T)
    lab = lab_ref[...]                                          # (1, T) int32
    m = jnp.max(logits, axis=0, keepdims=True)                  # (1, T)  XLU
    z = logits - m
    lse = jnp.log(jnp.sum(jnp.exp(z), axis=0, keepdims=True))   # (1, T)  EUP/XLU
    cls_idx = lax.broadcasted_iota(jnp.int32, logits.shape, 0)  # (C, T)
    # log p_t = z_t - lse; gather the target-class shifted logit directly
    # instead of materializing the full (C, T) log_softmax.
    z_t = jnp.sum(jnp.where(cls_idx == lab, z, 0.0),
                  axis=0, keepdims=True)                        # (1, T)
    logpt = z_t - lse
    ce = -logpt
    pt = jnp.exp(logpt)
    one_minus_pt = 1.0 - pt
    if isinstance(gamma, int) and gamma > 0:
        mod = one_minus_pt                                      # no ones vreg
        for _ in range(gamma - 1):                              # gamma=2 -> 1 mul
            mod = mod * one_minus_pt
    elif gamma == 0:
        mod = jnp.ones_like(one_minus_pt)
    else:
        mod = jnp.power(one_minus_pt, gamma)
    conf_out_ref[...] = (mod * ce) * scale


def _dense_box_loss(loc_pred, loc_target, conf_pred, labels_target,
                    num_classes=NUM_CLASSES, gamma=GAMMA, max_tile_n=None):
    """Runs the Pallas kernel; returns dense (B, A, 4) and (B, A) losses."""
    B, A, _ = loc_pred.shape
    C = conf_pred.shape[-1]
    assert C == num_classes
    N = B * A
    # PyTorch: num_positives = loc_target.size(0) on the *unmasked* (B, A, 4)
    # input, i.e. the batch size B (literal reading of the module).
    num_positives = loc_target.shape[0]
    inv_num_pos = 1.0 / float(num_positives)

    # --- loc: free row-major reshape views (no transpose, no copy) ---
    dense_view = (N % 32 == 0)
    if dense_view:
        loc_shape = (N // 32, 128)           # 4N elements, (8,128)-dense in VMEM
        max_tile = MAX_TILE_N_DENSE
    else:
        loc_shape = (1, 4 * N)               # lane-dense fallback
        max_tile = MAX_TILE_N_FLAT
    if max_tile_n is not None:
        max_tile = max_tile_n
    loc_p = loc_pred.reshape(loc_shape)      # keep native dtype (bf16 ok)
    loc_t = loc_target.reshape(loc_shape)

    # --- conf: anchors-on-lanes; the one transpose kept on purpose (header). ---
    conf = conf_pred.reshape(N, C).T         # (C, N), native dtype (bf16 ok)
    lab = labels_target.reshape(1, N).astype(jnp.int32)

    # --- tile / grid selection ---
    if N <= max_tile or N < 256:
        tile_n = N                           # single full-array block (always legal)
        steps = 1
    else:
        tile_n = max(256, _round_down(max_tile, 256))   # multiple of 256
        steps = pl.cdiv(N, tile_n)
        # Prefer an even step count so the "parallel" axis shards evenly across
        # v7x's two TensorCores (no straggler tile on one core).
        if steps >= 3 and steps % 2 == 1:
            cand = min(tile_n, max(256, _round_up(pl.cdiv(N, steps + 1), 256)))
            if pl.cdiv(N, cand) % 2 == 0:
                tile_n = cand
                steps = pl.cdiv(N, tile_n)
    grid = (steps,)

    if dense_view:
        loc_block = (tile_n // 32, 128)
        loc_index = lambda i: (i, 0)
    else:
        loc_block = (1, 4 * tile_n)
        loc_index = lambda i: (0, i)

    kernel = functools.partial(_box_loss_kernel, gamma=gamma,
                               inv_num_pos=inv_num_pos)

    loc_out, conf_out = pl.pallas_call(
        kernel,
        out_shape=(jax.ShapeDtypeStruct(loc_shape, jnp.float32),
                   jax.ShapeDtypeStruct((1, N), jnp.float32)),
        grid_spec=pltpu.PrefetchScalarGridSpec(
            num_scalar_prefetch=0,
            grid=grid,
            in_specs=[
                pl.BlockSpec(loc_block, loc_index),
                pl.BlockSpec(loc_block, loc_index),
                # Optional sweep: pipeline_mode=pl.Buffered(3) here if a trace
                # ever shows exposed DMA on the conf stream.
                pl.BlockSpec((C, tile_n), lambda i: (0, i)),
                pl.BlockSpec((1, tile_n), lambda i: (0, i)),
            ],
            out_specs=[
                pl.BlockSpec(loc_block, loc_index),
                pl.BlockSpec((1, tile_n), lambda i: (0, i)),
            ],
        ),
        compiler_params=pltpu.CompilerParams(
            dimension_semantics=("parallel",),
            # 32 MiB is safe on every generation (v7x physical VMEM = 64 MiB)
            # and lifts the 16 MiB scoped default on v5e for large tiles.
            vmem_limit_bytes=32 * 1024 * 1024,
        ),
    )(loc_p, loc_t, conf, lab)

    loc_loss = loc_out.reshape(B, A, 4)      # free reshape (no transpose)
    conf_loss = conf_out.reshape(B, A)       # free reshape
    return loc_loss, conf_loss


def box_loss(loc_pred, loc_target, conf_pred, labels_target,
             num_classes=NUM_CLASSES, gamma=GAMMA, max_tile_n=None):
    """Reproduces BoxLoss.forward: returns (loc_loss (P,4), conf_loss (P,))."""
    loc_dense, conf_dense = _dense_box_loss(
        loc_pred, loc_target, conf_pred, labels_target, num_classes, gamma,
        max_tile_n=max_tile_n)
    # Glue: compaction to positive rows (dynamic shape -> outside the kernel).
    mask = labels_target > 0                     # (B, A)
    loc_out = loc_dense[mask].reshape(-1, 4)     # (P, 4)
    conf_out = conf_dense[mask].reshape(-1)      # (P,)
    return loc_out, conf_out


def _reference(loc_pred, loc_target, conf_pred, labels_target, gamma=GAMMA):
    """Pure-JAX reference matching the PyTorch semantics."""
    mask = labels_target > 0
    num_pos = loc_target.shape[0]
    p_loc = loc_pred[mask].reshape(-1, 4)
    g_loc = loc_target[mask].reshape(-1, 4)
    p_conf = conf_pred[mask].reshape(-1, NUM_CLASSES)
    g_lab = labels_target[mask].reshape(-1)
    loc_loss = (p_loc - g_loc) ** 2
    logp = jax.nn.log_softmax(p_conf, axis=-1)
    logpt = jnp.take_along_axis(logp, g_lab[:, None], axis=-1)[:, 0]
    ce = -logpt
    pt = jnp.exp(logpt)
    conf_loss = ((1.0 - pt) ** gamma) * ce
    return loc_loss / num_pos, conf_loss / num_pos


def _run_case(key, B, A, C=NUM_CLASSES, max_tile_n=None):
    k1, k2, k3, k4 = jax.random.split(key, 4)
    loc_pred = jax.random.normal(k1, (B, A, 4), dtype=jnp.float32)
    loc_target = jax.random.normal(k2, (B, A, 4), dtype=jnp.float32)
    conf_pred = jax.random.normal(k3, (B, A, C), dtype=jnp.float32)
    labels_target = jax.random.randint(k4, (B, A), 0, C, dtype=jnp.int32)

    loc_loss, conf_loss = box_loss(loc_pred, loc_target, conf_pred,
                                   labels_target, max_tile_n=max_tile_n)
    jax.block_until_ready(loc_loss)
    jax.block_until_ready(conf_loss)

    ref_loc, ref_conf = _reference(loc_pred, loc_target, conf_pred, labels_target)
    assert loc_loss.shape == ref_loc.shape and conf_loss.shape == ref_conf.shape
    np.testing.assert_allclose(np.asarray(loc_loss), np.asarray(ref_loc),
                               rtol=1e-5, atol=1e-5)
    np.testing.assert_allclose(np.asarray(conf_loss), np.asarray(ref_conf),
                               rtol=1e-5, atol=1e-5)


if __name__ == "__main__":
    key = jax.random.PRNGKey(0)
    k_a, k_b, k_c = jax.random.split(key, 3)

    # Small aligned case (N = 128): single block, dense (N//32, 128) loc view.
    _run_case(k_a, B=2, A=64)
    # Ragged case (N = 274, N % 32 != 0): flat (1, 4N) loc view, two grid steps,
    # masked tail block, no padding copy.
    _run_case(k_b, B=2, A=137)
    # Multi-step dense-view case (N = 640, forced tile_n = 256 -> 3 grid steps,
    # ragged tail on every stream) to exercise the tiled dense path at small size.
    _run_case(k_c, B=4, A=160, max_tile_n=256)

    print("KERNEL_OK")
</pallas_src>

<mosaic_0001>
module attributes {stable_mosaic.version = 11 : i64} {
  func.func @_box_loss_kernel(%arg0: i32, %arg1: memref<4x128xf32, #tpu.memory_space<vmem>>, %arg2: memref<4x128xf32, #tpu.memory_space<vmem>>, %arg3: memref<11x128xf32, #tpu.memory_space<vmem>>, %arg4: memref<1x128xi32, #tpu.memory_space<vmem>>, %arg5: memref<4x128xf32, #tpu.memory_space<vmem>>, %arg6: memref<1x128xf32, #tpu.memory_space<vmem>>) attributes {dimension_semantics = [#tpu.dimension_semantics<parallel>], iteration_bounds = array<i64: 1>, scalar_prefetch = 0 : i64, scratch_operands = 0 : i64, tpu.core_type = #tpu.core_type<tc>, window_params = [{transform_indices = @transform_0, window_bounds = array<i64: 4, 128>}, {transform_indices = @transform_1, window_bounds = array<i64: 4, 128>}, {transform_indices = @transform_2, window_bounds = array<i64: 11, 128>}, {transform_indices = @transform_3, window_bounds = array<i64: 1, 128>}, {transform_indices = @transform_4, window_bounds = array<i64: 4, 128>}, {transform_indices = @transform_5, window_bounds = array<i64: 1, 128>}]} {
    %c0 = arith.constant 0 : index
    %c0_0 = arith.constant 0 : index
    %0 = vector.load %arg1[%c0, %c0_0] : memref<4x128xf32, #tpu.memory_space<vmem>>, vector<4x128xf32>
    %c0_1 = arith.constant 0 : index
    %c0_2 = arith.constant 0 : index
    %1 = vector.load %arg2[%c0_1, %c0_2] : memref<4x128xf32, #tpu.memory_space<vmem>>, vector<4x128xf32>
    %2 = arith.subf %0, %1 : vector<4x128xf32>
    %3 = arith.mulf %2, %2 : vector<4x128xf32>
    %cst = arith.constant 5.000000e-01 : f32
    %4 = vector.broadcast %cst : f32 to vector<4x128xf32>
    %5 = arith.mulf %3, %4 : vector<4x128xf32>
    %c0_3 = arith.constant 0 : index
    %c0_4 = arith.constant 0 : index
    %6 = vector.load %arg5[%c0_3, %c0_4] : memref<4x128xf32, #tpu.memory_space<vmem>>, vector<4x128xf32>
    tpu.vector_store %arg5[%c0_3, %c0_4], %5 {strides = array<i32>} : memref<4x128xf32, #tpu.memory_space<vmem>>, vector<4x128xf32>,
    %c0_5 = arith.constant 0 : index
    %c0_6 = arith.constant 0 : index
    %7 = vector.load %arg3[%c0_5, %c0_6] : memref<11x128xf32, #tpu.memory_space<vmem>>, vector<11x128xf32>
    %c0_7 = arith.constant 0 : index
    %c0_8 = arith.constant 0 : index
    %8 = vector.load %arg4[%c0_7, %c0_8] : memref<1x128xi32, #tpu.memory_space<vmem>>, vector<1x128xi32>
    %cst_9 = arith.constant dense<0xFF800000> : vector<128xf32>
    %9 = vector.multi_reduction <maximumf>, %7, %cst_9 [0] : vector<11x128xf32> to vector<128xf32>
    %10 = vector.shape_cast %9 : vector<128xf32> to vector<1x128xf32>
    %11 = vector.broadcast %10 : vector<1x128xf32> to vector<11x128xf32>
    %12 = arith.subf %7, %11 : vector<11x128xf32>
    %13 = math.exp %12 : vector<11x128xf32>
    %cst_10 = arith.constant dense<0.000000e+00> : vector<128xf32>
    %14 = vector.multi_reduction <add>, %13, %cst_10 [0] : vector<11x128xf32> to vector<128xf32>
    %15 = vector.shape_cast %14 : vector<128xf32> to vector<1x128xf32>
    %16 = math.log %15 : vector<1x128xf32>
    %17 = tpu.iota {dimensions = array<i32: 0>} : vector<11x128xi32>
    %18 = vector.broadcast %8 : vector<1x128xi32> to vector<11x128xi32>
    %19 = arith.cmpi eq, %17, %18 : vector<11x128xi32>
    %cst_11 = arith.constant 0.000000e+00 : f32
    %20 = vector.broadcast %cst_11 : f32 to vector<11x128xf32>
    %21 = arith.select %19, %12, %20 : vector<11x128xi1>, vector<11x128xf32>
    %cst_12 = arith.constant dense<0.000000e+00> : vector<128xf32>
    %22 = vector.multi_reduction <add>, %21, %cst_12 [0] : vector<11x128xf32> to vector<128xf32>
    %23 = vector.shape_cast %22 : vector<128xf32> to vector<1x128xf32>
    %24 = arith.subf %23, %16 : vector<1x128xf32>
    %cst_13 = arith.constant 0.000000e+00 : f32
    %25 = vector.broadcast %cst_13 : f32 to vector<1x128xf32>
    %26 = arith.subf %25, %24 : vector<1x128xf32>
    %27 = math.exp %24 : vector<1x128xf32>
    %cst_14 = arith.constant 1.000000e+00 : f32
    %28 = vector.broadcast %cst_14 : f32 to vector<1x128xf32>
    %29 = arith.subf %28, %27 : vector<1x128xf32>
    %30 = arith.mulf %29, %29 : vector<1x128xf32>
    %31 = arith.mulf %30, %26 : vector<1x128xf32>
    %cst_15 = arith.constant 5.000000e-01 : f32
    %32 = vector.broadcast %cst_15 : f32 to vector<1x128xf32>
    %33 = arith.mulf %31, %32 : vector<1x128xf32>
    %c0_16 = arith.constant 0 : index
    %c0_17 = arith.constant 0 : index
    %34 = vector.load %arg6[%c0_16, %c0_17] : memref<1x128xf32, #tpu.memory_space<vmem>>, vector<1x128xf32>
    tpu.vector_store %arg6[%c0_16, %c0_17], %33 {strides = array<i32>} : memref<1x128xf32, #tpu.memory_space<vmem>>, vector<1x128xf32>,
    return
  }
  func.func @transform_0(%arg0: i32) -> (i32, i32) {
    %c0_i32 = arith.constant 0 : i32
    %c0_i32_0 = arith.constant 0 : i32
    return %arg0, %c0_i32 : i32, i32
  }
  func.func @transform_1(%arg0: i32) -> (i32, i32) {
    %c0_i32 = arith.constant 0 : i32
    %c0_i32_0 = arith.constant 0 : i32
    return %arg0, %c0_i32 : i32, i32
  }
  func.func @transform_2(%arg0: i32) -> (i32, i32) {
    %c0_i32 = arith.constant 0 : i32
    %c0_i32_0 = arith.constant 0 : i32
    return %c0_i32, %arg0 : i32, i32
  }
  func.func @transform_3(%arg0: i32) -> (i32, i32) {
    %c0_i32 = arith.constant 0 : i32
    %c0_i32_0 = arith.constant 0 : i32
    return %c0_i32, %arg0 : i32, i32
  }
  func.func @transform_4(%arg0: i32) -> (i32, i32) {
    %c0_i32 = arith.constant 0 : i32
    %c0_i32_0 = arith.constant 0 : i32
    return %arg0, %c0_i32 : i32, i32
  }
  func.func @transform_5(%arg0: i32) -> (i32, i32) {
    %c0_i32 = arith.constant 0 : i32
    %c0_i32_0 = arith.constant 0 : i32
    return %c0_i32, %arg0 : i32, i32
  }
}

</mosaic_0001>

<bundles_post_ra>
// kernel: tpu_custom_call.1
= control target key start
LH: loop header
LB: loop body
LE: loop exit
PB: predicated region body
PF: predicated region fallthrough
CT: control target
= control target key end

     0   :  { %11 = vsyncpa [#allocation3], 0  ;;  %s387_s0 = inlined_call_operand.hbm [shape: f32[4,128], index: 0, kind: input, shape index: {}]   ;;  %s388_s1 = inlined_call_operand.hbm [shape: f32[4,128], index: 1, kind: input, shape index: {}]   ;;  %s389_s2 = inlined_call_operand.hbm [shape: f32[11,128], index: 2, kind: input, shape index: {}]   ;;  %s390_s3 = inlined_call_operand.vmem [shape: s32[1,128], index: 3, kind: input, shape index: {}]   ;;  %s391_s4 = inlined_call_operand.hbm [shape: f32[4,128], index: 4, kind: output, shape index: {0}]   ;;  %s392_s5 = inlined_call_operand.hbm [shape: f32[1,128], index: 5, kind: output, shape index: {1}]  }
   0x1   :  { %12 = vsyncpa [#allocation6], 0 }
   0x2   :  { %13 = vsyncpa [#allocation4], 0 }
   0x3   :  { %14 = vsyncpa [#allocation10], 0  ;;  %s284_s18 = smov [#allocation5]   ;;  %s285_s20 = smov [#allocation2]  }
   0x4   :  { %s31_s19 = sshll.u32 %s284_s18, 4  ;;  %s21_s21 = sshll.u32 %s285_s20, 4  ;;  %s32_s19 = int_to_ptr.vmem [resolvable:$true] %s31_s19  ;;  %s22_s21 = int_to_ptr.vmem [resolvable:$true] %s21_s21 }
   0x5   :  { %s166_s24 = scalar_lea.hbm %s388_s1, 64 }
   0x6   :  { %p167_p0 = scmp.ne.s32.totalorder %s388_s1, %s166_s24  ;;  %p170_p1 = scmp.lt.u32.totalorder %s166_s24, %s388_s1 }
   0x8   :  { %p172_p2 = pnand %p170_p1, %p167_p0 }
   0xa   :  { %175 = shalt.err (!%p172_p2)
}
   0xb   :  { %s176_s29 = scalar_lea.vmem %s32_s19, 64  ;;  %p181_p4 = scmp.lt.s32.totalorder %s32_s19, %s32_s19 }
   0xc   :  { %p177_p3 = scmp.ne.s32.totalorder %s32_s19, %s176_s29  ;;  %p182_p5 = scmp.lt.s32.totalorder %s176_s29, %s176_s29 }
   0xe   :  { %p183_p6 = por %p182_p5, %p181_p4 }
  0x10   :  { %p184_p7 = pnand %p183_p6, %p177_p3 }
  0x12   :  { %187 = shalt.err (!%p184_p7)
}
  0x13   :  { %34 = dma.hbm_to_vmem [thread:$0]  %s388_s1, 64, %s32_s19, [#allocation6]  }
  0x14   :  { %s188_s9 = scalar_lea.hbm %s387_s0, 64 }
  0x15   :  { %p189_p8 = scmp.ne.s32.totalorder %s387_s0, %s188_s9  ;;  %p192_p9 = scmp.lt.u32.totalorder %s188_s9, %s387_s0 }
  0x17   :  { %p194_p10 = pnand %p192_p9, %p189_p8 }
  0x19   :  { %197 = shalt.err (!%p194_p10)
}
  0x1a   :  { %s198_s14 = scalar_lea.vmem %s22_s21, 64  ;;  %p203_p12 = scmp.lt.s32.totalorder %s22_s21, %s22_s21 }
  0x1b   :  { %p199_p11 = scmp.ne.s32.totalorder %s22_s21, %s198_s14  ;;  %p204_p13 = scmp.lt.s32.totalorder %s198_s14, %s198_s14 }
  0x1d   :  { %p205_p0 = por %p204_p13, %p203_p12 }
  0x1f   :  { %p206_p1 = pnand %p205_p0, %p199_p11 }
  0x21   :  { %209 = shalt.err (!%p206_p1)
}
  0x22   :  { %24 = dma.hbm_to_vmem [thread:$0]  %s387_s0, 64, %s22_s21, [#allocation3]  }
  0x23   :  { %s286_s16 = smov [#allocation7]   ;;  %s210_s20 = scalar_lea.hbm %s389_s2, 256 }
  0x24   :  { %s40_s17 = sshll.u32 %s286_s16, 4  ;;  %p211_p2 = scmp.ne.s32.totalorder %s389_s2, %s210_s20  ;;  %s41_s17 = int_to_ptr.vmem [resolvable:$true] %s40_s17 }
  0x25   :  { %p214_p3 = scmp.lt.u32.totalorder %s210_s20, %s389_s2 }
  0x27   :  { %p216_p4 = pnand %p214_p3, %p211_p2 }
  0x29   :  { %219 = shalt.err (!%p216_p4)
}
  0x2a   :  { %s220_s26 = scalar_lea.vmem %s41_s17, 256  ;;  %p225_p6 = scmp.lt.s32.totalorder %s41_s17, %s41_s17 }
  0x2b   :  { %p221_p5 = scmp.ne.s32.totalorder %s41_s17, %s220_s26  ;;  %p226_p7 = scmp.lt.s32.totalorder %s220_s26, %s220_s26 }
  0x2d   :  { %p227_p8 = por %p226_p7, %p225_p6 }
  0x2f   :  { %p228_p9 = pnand %p227_p8, %p221_p5 }
  0x31   :  { %231 = shalt.err (!%p228_p9)
}
  0x32   :  { %s287_s0 = smov 128   ;;  %s288_s21 = smov 8  }
  0x33   :  { %46 = dma.hbm_to_vmem [thread:$0]  %s389_s2, 256, %s41_s17, [#allocation6], %s287_s0, %s287_s0, %s288_s21  }
  0x34   :  { %276 = dma.done.wait [#allocation3], 64  }
  0x35   :  { %277 = vsyncadd [#allocation3], 4294967232 }
  0x36   :  { %278 = dma.done.wait [#allocation6], 320  }
  0x37   :  { %279 = vsyncadd [#allocation6], 4294966976  ;;  %vm67_vm0 = vcmask 1042432   ;;  %v58_v0 = vld [vmem:[#allocation2] sm:$0xf]  ;;  %v64_v2 = vld [vmem:[#allocation7] sm:$0xff] }
  0x38   :  { %v59_v1 = vld [vmem:[#allocation5] sm:$0xf]  ;;  %v65_v4 = vld [vmem:[#allocation7 + $0x8] sm:$0x7]  ;;  %s289_s29 = smov [#allocation8]  }
  0x39   :  { %v60_v3 = vsub.f32 %v58_v0, %v59_v1  ;;  %v68_v5 = vsel %vm67_vm0, %v65_v4, -inf  ;;  %s126_s30 = sshll.u32 %s289_s29, 4  ;;  %s127_s30 = int_to_ptr.vmem [resolvable:$true] %s126_s30 }
  0x3a   :  { %v69_v7 = vmax.f32 %v64_v2, %v68_v5  ;;  %s232_s2 = scalar_lea.vmem %s127_s30, 64  ;;  %p237_p11 = scmp.lt.s32.totalorder %s127_s30, %s127_s30 }
  0x3b   :  { %v61_v6 = vmul.f32 %v60_v3, %v60_v3  ;;  %p233_p10 = scmp.ne.s32.totalorder %s127_s30, %s232_s2  ;;  %p238_p12 = scmp.lt.s32.totalorder %s232_s2, %s232_s2 }
  0x3c   :  { %v70_v9 = vrot.slane %v69_v7, 4 }
  0x3d   :  { %v62_v8 = vmul.f32 0.5, %v61_v6  ;;  %p239_p13 = por %p238_p12, %p237_p11 }
  0x3e   :  { %v71_v10 = vmax.f32 %v69_v7, %v70_v9 }
  0x3f   :  { %63 = vst [vmem:[#allocation8] sm:$0xf] %v62_v8  ;;  %p240_p0 = pnand %p239_p13, %p233_p10 }
  0x41   :  { %243 = shalt.err (!%p240_p0)
}
  0x42   :  { %s244_s8 = scalar_lea.hbm %s391_s4, 64 }
  0x43   :  { %p245_p1 = scmp.ne.s32.totalorder %s391_s4, %s244_s8  ;;  %p248_p2 = scmp.lt.u32.totalorder %s244_s8, %s391_s4 }
  0x45   :  { %p250_p3 = pnand %p248_p2, %p245_p1 }
  0x47   :  { %253 = shalt.err (!%p250_p3)
}
  0x48   :  { %129 = dma.vmem_to_hbm [thread:$0]  %s127_s30, 64, %s391_s4, [#allocation4]   ;;  %v72_v11 = vrot.slane %v71_v10, 2  ;;  %v92_v13 = vlaneseq  ;;  %v150_v22 = vld [vmem:[%s390_s3] ss:$0 sm:$0xff] }
  0x49   :  { %s290_s3 = smov [#allocation9]  }
  0x4a   :  { %v73_v12 = vmax.f32 %v71_v10, %v72_v11  ;;  %v93_v16 = vshrl.u32 %v92_v13, 7  ;;  %s136_s4 = sshll.u32 %s290_s3, 4  ;;  %s137_s4 = int_to_ptr.vmem [resolvable:$true] %s136_s4 }
  0x4b   :  { %s254_s16 = scalar_lea.vmem %s137_s4, 16  ;;  %s258_s17 = scalar_lea.vmem %s137_s4, 32 }
  0x4c   :  { %v74_v14 = vrot.slane %v73_v12, 1  ;;  %v94_v21 = vadd.s32 8, %v93_v16  ;;  %vm99_vm2 = vcmp.eq.s32.totalorder %v93_v16, %v150_v22  ;;  %p255_p4 = scmp.ne.s32.totalorder %s137_s4, %s254_s16  ;;  %p259_p5 = scmp.lt.s32.totalorder %s137_s4, %s137_s4 }
  0x4d   :  { %p260_p6 = scmp.lt.s32.totalorder %s258_s17, %s254_s16 }
  0x4e   :  { %v75_v15 = vmax.f32 %v73_v12, %v74_v14  ;;  %vm100_vm1 = vcmp.eq.s32.totalorder %v94_v21, %v150_v22 }
  0x4f   :  { %p261_p7 = por %p260_p6, %p259_p5 }
  0x50   :  { %v76_v17 = vsub.f32 %v64_v2, %v75_v15  ;;  %v77_v18 = vsub.f32 %v65_v4, %v75_v15 }
  0x51   :  { %p262_p8 = pnand %p261_p7, %p255_p4 }
  0x52   :  { %v78_v19 = vmul.f32 1.442695, %v76_v17  ;;  %v80_v20 = vmul.f32 1.442695, %v77_v18  ;;  %v102_v23 = vsel %vm100_vm1, %v77_v18, 0.0  ;;  %v101_v24 = vsel %vm99_vm2, %v76_v17, 0.0 }
  0x53   :  { %v103_v25 = vsel %vm67_vm0, %v102_v23, 0.0 }
  0x54   :  { %158 = vpow2.f32 %v78_v19  ;;  %v104_v29 = vadd.f32 %v103_v25, %v101_v24 }
  0x55   :  { %160 = vpow2.f32 %v80_v20 }
  0x56   :  { %v105_v32 = vrot.slane %v104_v29, 4 }
  0x58   :  { %v106_v35 = vadd.f32 %v105_v32, %v104_v29 }
  0x5a   :  { %v107_v38 = vrot.slane %v106_v35, 2 }
  0x5c   :  { %v108_v40 = vadd.f32 %v107_v38, %v106_v35 }
  0x5e   :  { %v159_v26 = vpop.eup %158  ;;  %v109_v41 = vrot.slane %v108_v40, 1 }
  0x5f   :  { %v161_v27 = vpop.eup %160 }
  0x60   :  { %v82_v28 = vsel %vm67_vm0, %v161_v27, 0.0  ;;  %v110_v42 = vadd.f32 %v109_v41, %v108_v40 }
  0x61   :  { %v83_v30 = vadd.f32 %v159_v26, %v82_v28 }
  0x63   :  { %v84_v31 = vrot.slane %v83_v30, 4 }
  0x65   :  { %v85_v33 = vadd.f32 %v84_v31, %v83_v30 }
  0x67   :  { %v86_v34 = vrot.slane %v85_v33, 2 }
  0x69   :  { %v87_v36 = vadd.f32 %v86_v34, %v85_v33 }
  0x6b   :  { %v88_v37 = vrot.slane %v87_v36, 1 }
  0x6d   :  { %v89_v39 = vadd.f32 %v88_v37, %v87_v36 }
  0x6f   :  { %162 = vlog2.f32 %v89_v39 }
  0x79   :  { %v163_v43 = vpop.eup %162 }
  0x7a   :  { %v91_v44 = vmul.f32 0.6931472, %v163_v43 }
  0x7c   :  { %v111_v45 = vsub.f32 %v110_v42, %v91_v44 }
  0x7e   :  { %v113_v46 = vmul.f32 1.442695, %v111_v45  ;;  %v112_v48 = vsub.f32 0.0, %v111_v45 }
  0x80   :  { %164 = vpow2.f32 %v113_v46 }
  0x8a   :  { %v165_v47 = vpop.eup %164 }
  0x8b   :  { %v115_v49 = vsub.f32 1.0, %v165_v47 }
  0x8d   :  { %v116_v50 = vmul.f32 %v115_v49, %v115_v49 }
  0x8f   :  { %v117_v51 = vmul.f32 %v116_v50, %v112_v48 }
  0x91   :  { %v118_v52 = vmul.f32 0.5, %v117_v51 }
  0x93   :  { %119 = vst [vmem:[#allocation9] sm:$0x1] %v118_v52 }
  0x94   :  { %265 = shalt.err (!%p262_p8)
}
  0x95   :  { %s266_s20 = scalar_lea.hbm %s392_s5, 16 }
  0x96   :  { %p267_p9 = scmp.ne.s32.totalorder %s392_s5, %s266_s20  ;;  %p270_p10 = scmp.lt.u32.totalorder %s266_s20, %s392_s5 }
  0x98   :  { %p272_p11 = pnand %p270_p10, %p267_p9 }
  0x9a   :  { %275 = shalt.err (!%p272_p11)
}
  0x9b   :  { %139 = dma.vmem_to_hbm [thread:$0]  %s137_s4, 16, %s392_s5, [#allocation10]  }
  0x9c   :  { %280 = dma.done.wait [#allocation4], 64  }
  0x9d   :  { %281 = vsyncadd [#allocation4], 4294967232 }
  0x9e   :  { %282 = dma.done.wait [#allocation10], 16  }
  0x9f   :  { %283 = vsyncadd [#allocation10], 4294967280 }
  0xa0   :  { %146 = vsyncpa [#allocation3], 1 }
  0xa1   :  { %147 = vsyncpa [#allocation6], 1 }
  0xa2   :  { %148 = vsyncpa [#allocation4], 1 }
  0xa3   :  { %149 = vsyncpa [#allocation10], 1 }

</bundles_post_ra>
